<compile_context>
chip_gen: v7x
topology: tpu7x:2x2x1
jax: 0.10.0
libtpu: 0.0.40
codegen_flags: <defaults>
</compile_context>

<pallas_src>
import functools

import jax
import jax.numpy as jnp
from jax.experimental import pallas as pl
from jax.experimental.pallas import tpu as pltpu

IN_F = 100      # logical input features (nn.Linear(100, 256))
HID = 256
OUT_F = 3
DEFAULT_TB = 2048  # batch tile (f32 x-tile ~800 KiB, double-buffered -> ~1.6 MiB)


def _mlp_kernel(x_ref, w1_ref, b1_ref, w2_ref, b2_ref, o_ref):
    # fc1 on the MXU: bf16 operands, f32 accumulation (K=100 handled by Mosaic padding).
    x_bf = x_ref[...].astype(jnp.bfloat16)                               # [TB, 100]
    h = jnp.dot(x_bf, w1_ref[...], preferred_element_type=jnp.float32)   # [TB, 256] f32
    h = jnp.maximum(h + b1_ref[...], 0.0)                                # bias + ReLU in f32

    # fc2 also on the MXU (N=3; MXU has huge slack here, far cheaper than XLU reductions).
    y = jnp.dot(h.astype(jnp.bfloat16), w2_ref[...],
                preferred_element_type=jnp.float32)                      # [TB, 3] f32
    o_ref[...] = (y + b2_ref[...]).astype(o_ref.dtype)


@functools.partial(jax.jit, static_argnames=("tb",))
def market_maker_forward(x, w1, b1, w2, b2, *, tb=DEFAULT_TB):
    """x: [B, 100] f32 -> [B, 3] f32 (same forward as the PyTorch module)."""
    B = x.shape[0]

    # One-time, tiny host-side prep: bf16 weights (biases stay f32). No padding of x.
    w1_bf = w1.astype(jnp.bfloat16)
    w2_bf = w2.astype(jnp.bfloat16)

    # Batch tile: don't exceed B rounded up to a sublane multiple; non-divisible grids
    # are handled by Pallas' masked boundary blocks (no explicit batch pad / extra HBM pass).
    tb = min(tb, int(pl.cdiv(B, 8)) * 8)
    grid = (int(pl.cdiv(B, tb)),)

    return pl.pallas_call(
        _mlp_kernel,
        out_shape=jax.ShapeDtypeStruct((B, OUT_F), jnp.float32),
        grid=grid,
        in_specs=[
            pl.BlockSpec((tb, IN_F), lambda i: (i, 0)),    # x: batch-tiled, pipelined
            pl.BlockSpec((IN_F, HID), lambda i: (0, 0)),   # w1 (bf16): VMEM-resident
            pl.BlockSpec((1, HID), lambda i: (0, 0)),      # b1 (f32)
            pl.BlockSpec((HID, OUT_F), lambda i: (0, 0)),  # w2 (bf16): VMEM-resident
            pl.BlockSpec((1, OUT_F), lambda i: (0, 0)),    # b2 (f32)
        ],
        out_specs=pl.BlockSpec((tb, OUT_F), lambda i: (i, 0)),
        compiler_params=pltpu.CompilerParams(
            dimension_semantics=("parallel",),             # shard batch tiles across TCs
        ),
    )(x, w1_bf, b1, w2_bf, b2)


def init_params(key):
    """Deterministic init mimicking nn.Linear's U(-1/sqrt(fan_in), 1/sqrt(fan_in))."""
    k1, k2, k3, k4 = jax.random.split(key, 4)
    bnd1 = 1.0 / jnp.sqrt(jnp.float32(IN_F))
    bnd2 = 1.0 / jnp.sqrt(jnp.float32(HID))
    w1 = jax.random.uniform(k1, (IN_F, HID), jnp.float32, -bnd1, bnd1)
    b1 = jax.random.uniform(k2, (1, HID), jnp.float32, -bnd1, bnd1)
    w2 = jax.random.uniform(k3, (HID, OUT_F), jnp.float32, -bnd2, bnd2)
    b2 = jax.random.uniform(k4, (1, OUT_F), jnp.float32, -bnd2, bnd2)
    return w1, b1, w2, b2


def _reference(x, w1, b1, w2, b2):
    return jnp.maximum(x @ w1 + b1, 0.0) @ w2 + b2


if __name__ == "__main__":
    key = jax.random.PRNGKey(0)
    kx, kp, kx2 = jax.random.split(key, 3)
    w1, b1, w2, b2 = init_params(kp)

    # Primary small check (single grid step, tb clamped to 8).
    batch = 8
    x = jax.random.normal(kx, (batch, IN_F), jnp.float32)
    out = market_maker_forward(x, w1, b1, w2, b2)
    jax.block_until_ready(out)
    ref = _reference(x, w1, b1, w2, b2)
    assert out.shape == (batch, OUT_F)
    # bf16 MXU operands with f32 accumulation -> loosened tolerance vs. pure-f32 reference.
    assert jnp.allclose(out, ref, atol=3e-2, rtol=2e-2), float(jnp.max(jnp.abs(out - ref)))

    # Secondary check: batch not divisible by the tile (grid=2, masked boundary block).
    batch2 = 2065
    x2 = jax.random.normal(kx2, (batch2, IN_F), jnp.float32)
    out2 = market_maker_forward(x2, w1, b1, w2, b2)
    jax.block_until_ready(out2)
    ref2 = _reference(x2, w1, b1, w2, b2)
    assert out2.shape == (batch2, OUT_F)
    assert jnp.allclose(out2, ref2, atol=3e-2, rtol=2e-2), float(jnp.max(jnp.abs(out2 - ref2)))

    print("KERNEL_OK")
</pallas_src>

<mosaic_0001>
module attributes {stable_mosaic.version = 11 : i64} {
  func.func @_mlp_kernel(%arg0: i32, %arg1: memref<8x100xf32, #tpu.memory_space<vmem>>, %arg2: memref<100x256xbf16, #tpu.memory_space<vmem>>, %arg3: memref<1x256xf32, #tpu.memory_space<vmem>>, %arg4: memref<256x3xbf16, #tpu.memory_space<vmem>>, %arg5: memref<1x3xf32, #tpu.memory_space<vmem>>, %arg6: memref<8x3xf32, #tpu.memory_space<vmem>>) attributes {dimension_semantics = [#tpu.dimension_semantics<parallel>], iteration_bounds = array<i64: 1>, scalar_prefetch = 0 : i64, scratch_operands = 0 : i64, tpu.core_type = #tpu.core_type<tc>, window_params = [{transform_indices = @transform_0, window_bounds = array<i64: 8, 100>}, {pipeline_mode = #tpu.pipeline_mode<synchronous>, transform_indices = @transform_1, window_bounds = array<i64: 100, 256>}, {pipeline_mode = #tpu.pipeline_mode<synchronous>, transform_indices = @transform_2, window_bounds = array<i64: 1, 256>}, {pipeline_mode = #tpu.pipeline_mode<synchronous>, transform_indices = @transform_3, window_bounds = array<i64: 256, 3>}, {pipeline_mode = #tpu.pipeline_mode<synchronous>, transform_indices = @transform_4, window_bounds = array<i64: 1, 3>}, {transform_indices = @transform_5, window_bounds = array<i64: 8, 3>}]} {
    %c0 = arith.constant 0 : index
    %c0_0 = arith.constant 0 : index
    %0 = vector.load %arg1[%c0, %c0_0] : memref<8x100xf32, #tpu.memory_space<vmem>>, vector<8x100xf32>
    %1 = arith.truncf %0 : vector<8x100xf32> to vector<8x100xbf16>
    %c0_1 = arith.constant 0 : index
    %c0_2 = arith.constant 0 : index
    %2 = vector.load %arg2[%c0_1, %c0_2] : memref<100x256xbf16, #tpu.memory_space<vmem>>, vector<100x256xbf16>
    %cst = arith.constant dense<0.000000e+00> : vector<8x256xf32>
    %3 = tpu.matmul %1, %2, %cst {dimension_numbers = #tpu.dot_dimension_numbers<[1], [0], [0], [1], [0, 0, 1, 1], [], []>} : vector<8x100xbf16>, vector<100x256xbf16>, vector<8x256xf32> -> vector<8x256xf32>
    %c0_3 = arith.constant 0 : index
    %c0_4 = arith.constant 0 : index
    %4 = vector.load %arg3[%c0_3, %c0_4] : memref<1x256xf32, #tpu.memory_space<vmem>>, vector<1x256xf32>
    %5 = vector.broadcast %4 : vector<1x256xf32> to vector<8x256xf32>
    %6 = arith.addf %3, %5 : vector<8x256xf32>
    %cst_5 = arith.constant 0.000000e+00 : f32
    %7 = vector.broadcast %cst_5 : f32 to vector<8x256xf32>
    %8 = arith.maximumf %6, %7 : vector<8x256xf32>
    %9 = arith.truncf %8 : vector<8x256xf32> to vector<8x256xbf16>
    %c0_6 = arith.constant 0 : index
    %c0_7 = arith.constant 0 : index
    %10 = vector.load %arg4[%c0_6, %c0_7] : memref<256x3xbf16, #tpu.memory_space<vmem>>, vector<256x3xbf16>
    %cst_8 = arith.constant dense<0.000000e+00> : vector<8x3xf32>
    %11 = tpu.matmul %9, %10, %cst_8 {dimension_numbers = #tpu.dot_dimension_numbers<[1], [0], [0], [1], [0, 0, 1, 1], [], []>} : vector<8x256xbf16>, vector<256x3xbf16>, vector<8x3xf32> -> vector<8x3xf32>
    %c0_9 = arith.constant 0 : index
    %c0_10 = arith.constant 0 : index
    %12 = vector.load %arg5[%c0_9, %c0_10] : memref<1x3xf32, #tpu.memory_space<vmem>>, vector<1x3xf32>
    %13 = vector.broadcast %12 : vector<1x3xf32> to vector<8x3xf32>
    %14 = arith.addf %11, %13 : vector<8x3xf32>
    %c0_11 = arith.constant 0 : index
    %c0_12 = arith.constant 0 : index
    %15 = vector.load %arg6[%c0_11, %c0_12] : memref<8x3xf32, #tpu.memory_space<vmem>>, vector<8x3xf32>
    tpu.vector_store %arg6[%c0_11, %c0_12], %14 {strides = array<i32>} : memref<8x3xf32, #tpu.memory_space<vmem>>, vector<8x3xf32>,
    return
  }
  func.func @transform_0(%arg0: i32) -> (i32, i32) {
    %c0_i32 = arith.constant 0 : i32
    %c0_i32_0 = arith.constant 0 : i32
    return %arg0, %c0_i32 : i32, i32
  }
  func.func @transform_1(%arg0: i32) -> (i32, i32) {
    %c0_i32 = arith.constant 0 : i32
    %c0_i32_0 = arith.constant 0 : i32
    %c0_i32_1 = arith.constant 0 : i32
    return %c0_i32, %c0_i32_0 : i32, i32
  }
  func.func @transform_2(%arg0: i32) -> (i32, i32) {
    %c0_i32 = arith.constant 0 : i32
    %c0_i32_0 = arith.constant 0 : i32
    %c0_i32_1 = arith.constant 0 : i32
    return %c0_i32, %c0_i32_0 : i32, i32
  }
  func.func @transform_3(%arg0: i32) -> (i32, i32) {
    %c0_i32 = arith.constant 0 : i32
    %c0_i32_0 = arith.constant 0 : i32
    %c0_i32_1 = arith.constant 0 : i32
    return %c0_i32, %c0_i32_0 : i32, i32
  }
  func.func @transform_4(%arg0: i32) -> (i32, i32) {
    %c0_i32 = arith.constant 0 : i32
    %c0_i32_0 = arith.constant 0 : i32
    %c0_i32_1 = arith.constant 0 : i32
    return %c0_i32, %c0_i32_0 : i32, i32
  }
  func.func @transform_5(%arg0: i32) -> (i32, i32) {
    %c0_i32 = arith.constant 0 : i32
    %c0_i32_0 = arith.constant 0 : i32
    return %arg0, %c0_i32 : i32, i32
  }
}

</mosaic_0001>

<bundles_post_ra>
// kernel: market_maker_forward.1
= control target key start
LH: loop header
LB: loop body
LE: loop exit
PB: predicated region body
PF: predicated region fallthrough
CT: control target
= control target key end

     0   :  { %v442_v1 = vmov 0   ;;  %vm117_vm0 = vcmask 1041408   ;;  %vm113_vm1 = vcmask 818176   ;;  %v38_v35 = vlaneseq  ;;  %s572_s1 = inlined_call_operand.vmem [shape: bf16[100,256], index: 1, kind: input, shape index: {}]   ;;  %s573_s3 = inlined_call_operand.vmem [shape: bf16[256,3], index: 3, kind: input, shape index: {}]   ;;  %s574_s0 = inlined_call_operand.vmem [shape: f32[8,100], index: 0, kind: input, shape index: {}]   ;;  %s575_s2 = inlined_call_operand.vmem [shape: f32[1,256], index: 2, kind: input, shape index: {}]   ;;  %s576_s4 = inlined_call_operand.vmem [shape: f32[1,3], index: 4, kind: input, shape index: {}]   ;;  %s577_s5 = inlined_call_operand.vmem [shape: f32[8,3], index: 5, kind: output, shape index: {}]  }
   0x1   :  { %v406_v0 = vld [vmem:[%s572_s1 + $0x4] ss:$8 sps:$4 sm:$0xff]   ;;  %156 = vmatprep.mubr.bf16.mxu0 %v442_v1  ;;  %v408_v2 = vld [vmem:[%s572_s1] ss:$8 sps:$4 sm:$0xff]   ;;  %v409_v3 = vld [vmem:[%s572_s1 + $0x14] ss:$8 sps:$4 sm:$0xff]  }
   0x2   :  { %124 = vmatprep.subr.bf16.mxu0 %v406_v0  ;;  %v411_v4 = vld [vmem:[%s572_s1 + $0x10] ss:$8 sps:$4 sm:$0xff]   ;;  %v412_v5 = vld [vmem:[%s572_s1 + $0x24] ss:$8 sps:$4 sm:$0xff]   ;;  %v414_v6 = vld [vmem:[%s572_s1 + $0x20] ss:$8 sps:$4 sm:$0xff]  }
   0x3   :  { %125 = vmatpush1.bf16.msra.mxu0 %v408_v2  ;;  %v415_v7 = vld [vmem:[%s572_s1 + $0x34] ss:$8 sps:$4 sm:$0xff]   ;;  %v417_v8 = vld [vmem:[%s572_s1 + $0x30] ss:$8 sps:$4 sm:$0xff]   ;;  %v426_v9 = vld [vmem:[%s573_s3 + $0x40] sm:$0xff]   ;;  %v39_v36 = vshrl.u32 %v38_v35, 7 }
   0x4   :  { %126 = vmatprep.subr.bf16.mxu0 %v409_v3  ;;  %v418_v10 = vld [vmem:[%s572_s1 + $0x44] ss:$8 sps:$4 sm:$0xff]   ;;  %383 = vmatprep.subr.bf16.mxu1 %v426_v9  ;;  %v420_v14 = vld [vmem:[%s572_s1 + $0x40] ss:$8 sps:$4 sm:$0xff]   ;;  %v430_v15 = vld [vmem:[%s573_s3 + $0x50] sm:$0xff]   ;;  %vm344_vm2 = vcmask 23552  }
   0x5   :  { %v427_v11 = vld [vmem:[%s573_s3] sm:$0xff]   ;;  %v428_v12 = vld [vmem:[%s573_s3 + $0x48] sm:$0xff]   ;;  %v421_v16 = vld [vmem:[%s572_s1 + $0x54] ss:$8 sps:$4 sm:$0xff]   ;;  %v40_v37 = vsub.s32 0, %v39_v36  ;;  %v44_v39 = vsub.s32 1, %v39_v36 }
   0x6   :  { %384 = vmatpush3.bf16.msra.mxu1 %v427_v11  ;;  %v429_v13 = vld [vmem:[%s573_s3 + $0x8] sm:$0xff]   ;;  %v35_v17 = vld [vmem:[%s572_s1 + $0x60] sm:$0x33]  ;;  %v431_v18 = vld [vmem:[%s573_s3 + $0x10] sm:$0xff]  }
   0x7   :  { %127 = vmatpush1.bf16.msra.mxu0 %v411_v4  ;;  %385 = vmatprep.subr.bf16.mxu1 %v428_v12  ;;  %v432_v19 = vld [vmem:[%s573_s3 + $0x58] sm:$0xff]   ;;  %v363_v21 = vcombine.high %v35_v17, %v35_v17  ;;  %v362_v22 = vcombine.low %v35_v17, %v35_v17  ;;  %v434_v24 = vld [vmem:[%s573_s3 + $0x60] sm:$0xff]   ;;  %v436_v28 = vld [vmem:[%s573_s3 + $0x68] sm:$0xff]  }
   0x8   :  { %128 = vmatprep.subr.bf16.mxu0 %v412_v5  ;;  %v423_v20 = vld [vmem:[%s572_s1 + $0x50] ss:$8 sps:$4 sm:$0xff]   ;;  %v21_v25 = vld [vmem:[%s574_s0] sm:$0xff]  ;;  %v437_v30 = vld [vmem:[%s573_s3 + $0x28] sm:$0xff]  }
   0x9   :  { %v433_v23 = vld [vmem:[%s573_s3 + $0x18] sm:$0xff]   ;;  %v119_v26 = vsel %vm117_vm0, %v362_v22, 0  ;;  %v435_v27 = vld [vmem:[%s573_s3 + $0x20] sm:$0xff]   ;;  %v22_v29 = vpack.c.bf16 %v21_v25, %v21_v25  ;;  %v438_v31 = vld [vmem:[%s573_s3 + $0x70] sm:$0xff]  }
   0xa   :  { %386 = vmatpush3.bf16.msra.mxu1 %v429_v13  ;;  %v439_v32 = vld [vmem:[%s573_s3 + $0x30] sm:$0xff]   ;;  %v440_v33 = vld [vmem:[%s573_s3 + $0x78] sm:$0xff]   ;;  %v36_v38 = vld [vmem:[%s575_s2] sm:$0x3] }
   0xb   :  { %129 = vmatpush1.bf16.msra.mxu0 %v414_v6  ;;  %387 = vmatprep.subr.bf16.mxu1 %v430_v15  ;;  %v441_v34 = vld [vmem:[%s573_s3 + $0x38] sm:$0xff]   ;;  %v41_v40 = vrot.slane %v36_v38, %v40_v37  ;;  %v45_v41 = vrot.slane %v36_v38, %v44_v39  ;;  %v366_v53 = vld [vmem:[%s576_s4] ss:$0 sm:$0xff] }
   0xc   :  { %130 = vmatprep.subr.bf16.mxu0 %v415_v7 }
   0xe   :  { %388 = vmatpush3.bf16.msra.mxu1 %v431_v18 }
   0xf   :  { %131 = vmatpush1.bf16.msra.mxu0 %v417_v8  ;;  %389 = vmatprep.subr.bf16.mxu1 %v432_v19 }
  0x10   :  { %132 = vmatprep.subr.bf16.mxu0 %v418_v10 }
  0x12   :  { %390 = vmatpush3.bf16.msra.mxu1 %v433_v23 }
  0x13   :  { %133 = vmatpush1.bf16.msra.mxu0 %v420_v14  ;;  %391 = vmatprep.subr.bf16.mxu1 %v434_v24 }
  0x14   :  { %134 = vmatprep.subr.bf16.mxu0 %v421_v16 }
  0x16   :  { %392 = vmatpush3.bf16.msra.mxu1 %v435_v27 }
  0x17   :  { %135 = vmatpush1.bf16.msra.mxu0 %v423_v20  ;;  %393 = vmatprep.subr.bf16.mxu1 %v436_v28 }
  0x18   :  { %364 = vmatprep.subr.msk.bf16.mxu0 %vm117_vm0, %v363_v21 }
  0x1a   :  { %394 = vmatpush3.bf16.msra.mxu1 %v437_v30 }
  0x1b   :  { %137 = vmatpush1.bf16.msra.mxu0 %v119_v26  ;;  %395 = vmatprep.subr.bf16.mxu1 %v438_v31 }
  0x1e   :  { %365 = vmatmul.mubr.msk.bf16.vlgmr.msra.gmra.mrb[0].mxu0 %vm113_vm1, %v22_v29  ;;  %396 = vmatpush3.bf16.msra.mxu1 %v439_v32 }
  0x1f   :  { %397 = vmatprep.subr.bf16.mxu1 %v440_v33 }
  0x22   :  { %398 = vmatpush3.bf16.msra.mxu1 %v441_v34 }
  0xf1   :  { %v158_v42 = vpop.f32.mrb[0].mxu0 }
  0xf2   :  { %v159_v43 = vadd.f32 %v158_v42, %v41_v40  ;;  %v160_v44 = vpop.f32.mrb[1].mxu0 }
  0xf3   :  { %v161_v45 = vadd.f32 %v160_v44, %v45_v41  ;;  %v162_v46 = vpop.f32.mrb[2].mxu0 }
  0xf4   :  { %v165_v47 = vmax.f32 %v159_v43, 0.0  ;;  %v163_v48 = vpop.f32.mrb[3].mxu0 }
  0xf5   :  { %v166_v49 = vmax.f32 %v161_v45, 0.0 }
  0xf6   :  { %v167_v51 = vpack.c.bf16 %v165_v47, %v165_v47 }
  0xf7   :  { %v168_v50 = vpack.c.bf16 %v166_v49, %v166_v49 }
  0xf9   :  { %336 = vmatprep.mubr.bf16.mxu1 %v168_v50 }
  0xfa   :  { %337 = vmatmul.mubr.bf16.vlgmr.msra.gmra.mrb[0].mxu1 %v167_v51 }
 0x1cd   :  { %v399_v52 = vpop.f32.mrb[0].mxu1 }
 0x1ce   :  { %v400_v54 = vpop.f32.mrb[1].mxu1 }
 0x1cf   :  { %v401_v55 = vadd.f32 %v400_v54, %v399_v52  ;;  %v402_v56 = vpop.f32.mrb[2].mxu1 }
 0x1d0   :  { %v403_v57 = vpop.f32.mrb[3].mxu1 }
 0x1d1   :  { %v339_v58 = vadd.f32 %v401_v55, %v366_v53 }
 0x1d3   :  { %345 = vst.msk [vmem:[%s577_s5] sm:$0xff] %vm344_vm2, %v339_v58 }

</bundles_post_ra>
